<compile_context>
chip_gen: v7x
topology: tpu7x:2x2x1
jax: 0.10.0
libtpu: 0.0.40
codegen_flags: <defaults>
</compile_context>

<pallas_src>
import jax
import jax.numpy as jnp
from jax.experimental import pallas as pl
from jax.experimental.pallas import tpu as pltpu


def _round_up(x, m):
    return (x + m - 1) // m * m


def mlp_pose_kernel(x_ref, w1_ref, b1_ref, w2_ref, b2_ref, o_ref):
    # One batch tile per grid step. Weights/biases are full (resident) blocks.
    x = x_ref[...]                                                   # (TILE_B, K)
    h = jnp.dot(x, w1_ref[...],
                preferred_element_type=jnp.float32) + b1_ref[...]    # (TILE_B, H)
    h = jnp.maximum(h, 0.0)                                          # ReLU (VPU)
    # Dropout: identity (inference mode).
    y = jnp.dot(h, w2_ref[...],
                preferred_element_type=jnp.float32) + b2_ref[...]    # (TILE_B, N)
    o_ref[...] = y.astype(o_ref.dtype)


def mlp_pose_estimator(x, w1, b1, w2, b2, joint_num, dimension, tile_b=4096):
    """x: (B, J_in, D_in), w1: (K, H), b1: (H,)|(1,H), w2: (H, N), b2: (N,)|(1,N).
    Returns (B, joint_num, dimension) float32."""
    B = x.shape[0]
    K = x.shape[1] * x.shape[2]
    H = w1.shape[1]
    N = joint_num * dimension
    assert w1.shape == (K, H) and w2.shape == (H, N)

    f32 = jnp.float32
    x_flat = x.reshape(B, K).astype(f32)
    w1_f = w1.astype(f32)
    w2_f = w2.astype(f32)
    b1_r = b1.reshape(1, H).astype(f32)
    b2_r = b2.reshape(1, N).astype(f32)

    # Pad batch only to a multiple of 8 sublanes (rows beyond B are zeros and
    # are sliced off at the end).  No lane padding in HBM.
    B_pad = _round_up(max(B, 8), 8)
    if B_pad != B:
        x_flat = jnp.pad(x_flat, ((0, B_pad - B), (0, 0)))

    # Batch tile: multiple of 8, no larger than the (padded) batch.
    tile_b = max(8, min(_round_up(tile_b, 8), B_pad))
    grid = (pl.cdiv(B_pad, tile_b),)

    flops = 2 * B_pad * (K * H + H * N)
    bytes_accessed = 4 * (B_pad * K + K * H + H + H * N + N + B_pad * N)

    y = pl.pallas_call(
        mlp_pose_kernel,
        out_shape=jax.ShapeDtypeStruct((B_pad, N), f32),
        grid=grid,
        in_specs=[
            pl.BlockSpec((tile_b, K), lambda i: (i, 0)),   # x tile, pipelined
            pl.BlockSpec((K, H), lambda i: (0, 0)),        # w1 resident
            pl.BlockSpec((1, H), lambda i: (0, 0)),        # b1 resident
            pl.BlockSpec((H, N), lambda i: (0, 0)),        # w2 resident
            pl.BlockSpec((1, N), lambda i: (0, 0)),        # b2 resident
        ],
        out_specs=pl.BlockSpec((tile_b, N), lambda i: (i, 0)),
        compiler_params=pltpu.CompilerParams(
            dimension_semantics=("parallel",),
            vmem_limit_bytes=32 * 1024 * 1024,
        ),
        cost_estimate=pl.CostEstimate(
            flops=flops, transcendentals=0, bytes_accessed=bytes_accessed),
    )(x_flat, w1_f, b1_r, w2_f, b2_r)

    # Row slice (drops batch padding) + free reshape; no lane-slicing copy.
    return y[:B].reshape(B, joint_num, dimension)


if __name__ == "__main__":
    # Small shapes consistent with the module:
    #   input_shape = (17, 2)  -> input_dim = 34
    #   hidden_dim  = 32       (small synthetic hidden size)
    #   joint_num   = 17, dimension = 3 -> output_dim = 51
    B = 2
    input_shape = (17, 2)
    input_dim = input_shape[0] * input_shape[1]
    hidden_dim = 32
    joint_num, dimension = 17, 3
    out_dim = joint_num * dimension

    key = jax.random.PRNGKey(0)
    kx, kw1, kb1, kw2, kb2 = jax.random.split(key, 5)

    x = jax.random.normal(kx, (B, *input_shape), dtype=jnp.float32)
    # Deterministic "Linear" parameter init (synthetic, not a checkpoint).
    w1 = jax.random.normal(kw1, (input_dim, hidden_dim), dtype=jnp.float32) * 0.05
    b1 = jax.random.normal(kb1, (1, hidden_dim), dtype=jnp.float32) * 0.05
    w2 = jax.random.normal(kw2, (hidden_dim, out_dim), dtype=jnp.float32) * 0.05
    b2 = jax.random.normal(kb2, (1, out_dim), dtype=jnp.float32) * 0.05

    out = mlp_pose_estimator(x, w1, b1, w2, b2, joint_num, dimension)
    jax.block_until_ready(out)

    # Pure-JAX reference check of the same math (eval mode: dropout = identity).
    xf = x.reshape(B, -1)
    ref = (jnp.maximum(xf @ w1 + b1, 0.0) @ w2 + b2).reshape(B, joint_num, dimension)
    assert out.shape == (B, joint_num, dimension)
    assert jnp.allclose(out, ref, atol=1e-5, rtol=1e-5)

    print("KERNEL_OK")
</pallas_src>

<mosaic_0001>
module attributes {stable_mosaic.version = 11 : i64} {
  func.func @mlp_pose_kernel(%arg0: i32, %arg1: memref<8x34xf32, #tpu.memory_space<vmem>>, %arg2: memref<34x32xf32, #tpu.memory_space<vmem>>, %arg3: memref<1x32xf32, #tpu.memory_space<vmem>>, %arg4: memref<32x51xf32, #tpu.memory_space<vmem>>, %arg5: memref<1x51xf32, #tpu.memory_space<vmem>>, %arg6: memref<8x51xf32, #tpu.memory_space<vmem>>) attributes {dimension_semantics = [#tpu.dimension_semantics<parallel>], iteration_bounds = array<i64: 1>, scalar_prefetch = 0 : i64, scratch_operands = 0 : i64, tpu.core_type = #tpu.core_type<tc>, window_params = [{transform_indices = @transform_0, window_bounds = array<i64: 8, 34>}, {pipeline_mode = #tpu.pipeline_mode<synchronous>, transform_indices = @transform_1, window_bounds = array<i64: 34, 32>}, {pipeline_mode = #tpu.pipeline_mode<synchronous>, transform_indices = @transform_2, window_bounds = array<i64: 1, 32>}, {pipeline_mode = #tpu.pipeline_mode<synchronous>, transform_indices = @transform_3, window_bounds = array<i64: 32, 51>}, {pipeline_mode = #tpu.pipeline_mode<synchronous>, transform_indices = @transform_4, window_bounds = array<i64: 1, 51>}, {transform_indices = @transform_5, window_bounds = array<i64: 8, 51>}]} {
    %c0 = arith.constant 0 : index
    %c0_0 = arith.constant 0 : index
    %0 = vector.load %arg1[%c0, %c0_0] : memref<8x34xf32, #tpu.memory_space<vmem>>, vector<8x34xf32>
    %c0_1 = arith.constant 0 : index
    %c0_2 = arith.constant 0 : index
    %1 = vector.load %arg2[%c0_1, %c0_2] : memref<34x32xf32, #tpu.memory_space<vmem>>, vector<34x32xf32>
    %cst = arith.constant dense<0.000000e+00> : vector<8x32xf32>
    %2 = tpu.matmul %0, %1, %cst {dimension_numbers = #tpu.dot_dimension_numbers<[1], [0], [0], [1], [0, 0, 1, 1], [], []>} : vector<8x34xf32>, vector<34x32xf32>, vector<8x32xf32> -> vector<8x32xf32>
    %c0_3 = arith.constant 0 : index
    %c0_4 = arith.constant 0 : index
    %3 = vector.load %arg3[%c0_3, %c0_4] : memref<1x32xf32, #tpu.memory_space<vmem>>, vector<1x32xf32>
    %4 = vector.broadcast %3 : vector<1x32xf32> to vector<8x32xf32>
    %5 = arith.addf %2, %4 : vector<8x32xf32>
    %cst_5 = arith.constant 0.000000e+00 : f32
    %6 = vector.broadcast %cst_5 : f32 to vector<8x32xf32>
    %7 = arith.maximumf %5, %6 : vector<8x32xf32>
    %c0_6 = arith.constant 0 : index
    %c0_7 = arith.constant 0 : index
    %8 = vector.load %arg4[%c0_6, %c0_7] : memref<32x51xf32, #tpu.memory_space<vmem>>, vector<32x51xf32>
    %cst_8 = arith.constant dense<0.000000e+00> : vector<8x51xf32>
    %9 = tpu.matmul %7, %8, %cst_8 {dimension_numbers = #tpu.dot_dimension_numbers<[1], [0], [0], [1], [0, 0, 1, 1], [], []>} : vector<8x32xf32>, vector<32x51xf32>, vector<8x51xf32> -> vector<8x51xf32>
    %c0_9 = arith.constant 0 : index
    %c0_10 = arith.constant 0 : index
    %10 = vector.load %arg5[%c0_9, %c0_10] : memref<1x51xf32, #tpu.memory_space<vmem>>, vector<1x51xf32>
    %11 = vector.broadcast %10 : vector<1x51xf32> to vector<8x51xf32>
    %12 = arith.addf %9, %11 : vector<8x51xf32>
    %c0_11 = arith.constant 0 : index
    %c0_12 = arith.constant 0 : index
    %13 = vector.load %arg6[%c0_11, %c0_12] : memref<8x51xf32, #tpu.memory_space<vmem>>, vector<8x51xf32>
    tpu.vector_store %arg6[%c0_11, %c0_12], %12 {strides = array<i32>} : memref<8x51xf32, #tpu.memory_space<vmem>>, vector<8x51xf32>,
    return
  }
  func.func @transform_0(%arg0: i32) -> (i32, i32) {
    %c0_i32 = arith.constant 0 : i32
    %c0_i32_0 = arith.constant 0 : i32
    return %arg0, %c0_i32 : i32, i32
  }
  func.func @transform_1(%arg0: i32) -> (i32, i32) {
    %c0_i32 = arith.constant 0 : i32
    %c0_i32_0 = arith.constant 0 : i32
    %c0_i32_1 = arith.constant 0 : i32
    return %c0_i32, %c0_i32_0 : i32, i32
  }
  func.func @transform_2(%arg0: i32) -> (i32, i32) {
    %c0_i32 = arith.constant 0 : i32
    %c0_i32_0 = arith.constant 0 : i32
    %c0_i32_1 = arith.constant 0 : i32
    return %c0_i32, %c0_i32_0 : i32, i32
  }
  func.func @transform_3(%arg0: i32) -> (i32, i32) {
    %c0_i32 = arith.constant 0 : i32
    %c0_i32_0 = arith.constant 0 : i32
    %c0_i32_1 = arith.constant 0 : i32
    return %c0_i32, %c0_i32_0 : i32, i32
  }
  func.func @transform_4(%arg0: i32) -> (i32, i32) {
    %c0_i32 = arith.constant 0 : i32
    %c0_i32_0 = arith.constant 0 : i32
    %c0_i32_1 = arith.constant 0 : i32
    return %c0_i32, %c0_i32_0 : i32, i32
  }
  func.func @transform_5(%arg0: i32) -> (i32, i32) {
    %c0_i32 = arith.constant 0 : i32
    %c0_i32_0 = arith.constant 0 : i32
    return %arg0, %c0_i32 : i32, i32
  }
}

</mosaic_0001>

<bundles_post_ra>
// kernel: tpu_custom_call.1
= control target key start
LH: loop header
LB: loop body
LE: loop exit
PB: predicated region body
PF: predicated region fallthrough
CT: control target
= control target key end

     0   :  { %v294_v3 = vmov 0.0|0.0   ;;  %vm295_vm0 = vmmov 0   ;;  %v296_v6 = vmov 0.0   ;;  %s376_s0 = inlined_call_operand.vmem [shape: f32[8,34], index: 0, kind: input, shape index: {}]   ;;  %s377_s1 = inlined_call_operand.vmem [shape: f32[34,32], index: 1, kind: input, shape index: {}]   ;;  %s378_s2 = inlined_call_operand.vmem [shape: f32[1,32], index: 2, kind: input, shape index: {}]   ;;  %s379_s3 = inlined_call_operand.vmem [shape: f32[32,51], index: 3, kind: input, shape index: {}]   ;;  %s380_s4 = inlined_call_operand.vmem [shape: f32[1,51], index: 4, kind: input, shape index: {}]   ;;  %s381_s5 = inlined_call_operand.hbm [shape: f32[8,51], index: 5, kind: output, shape index: {}]  }
   0x1   :  { %v22_v0 = vld [vmem:[%s377_s1] sm:$0xff]  ;;  %v23_v1 = vld [vmem:[%s377_s1 + $0x8] sm:$0xff]  ;;  %v24_v2 = vld [vmem:[%s377_s1 + $0x10] sm:$0xff]  ;;  %254 = vmatprep.subr.bf16.mxu0 %v294_v3  ;;  %260 = vmatprep.subr.bf16.mxu1 %v294_v3 }
   0x2   :  { %v255_v4 = vpack.c.bf16 %v23_v1, %v22_v0  ;;  %v25_v5 = vld [vmem:[%s377_s1 + $0x18] sm:$0xff]  ;;  %240 = vmatprep.mubr.msk.f32.mxu0 %vm295_vm0, %v296_v6  ;;  %v113_v7 = vld [vmem:[%s379_s3] sm:$0xff]  ;;  %v114_v8 = vld [vmem:[%s379_s3 + $0x8] sm:$0xff]  ;;  %251 = vmatprep.mubr.msk.f32.mxu1 %vm295_vm0, %v296_v6 }
   0x3   :  { %v258_v9 = vpack.c.bf16 %v25_v5, %v24_v2  ;;  %v261_v10 = vpack.c.bf16 %v114_v8, %v113_v7 }
   0x4   :  { %256 = vmatpush3.bf16.msra.mxu0 %v255_v4 }
   0x5   :  { %10 = vsyncpa [#allocation3], 0  ;;  %257 = vmatprep.subr.bf16.mxu0 %v294_v3  ;;  %262 = vmatpush3.bf16.msra.mxu1 %v261_v10  ;;  %v26_v11 = vld [vmem:[%s377_s1 + $0x20] sm:$0x3]  ;;  %vm38_vm1 = vcmask 1041408   ;;  %vm34_vm2 = vcmask 277504  }
   0x6   :  { %263 = vmatprep.subr.bf16.mxu1 %v294_v3  ;;  %v21_v12 = vld [vmem:[%s376_s0] sm:$0xff]  ;;  %v115_v13 = vld [vmem:[%s379_s3 + $0x10] sm:$0xff]  ;;  %v116_v14 = vld [vmem:[%s379_s3 + $0x18] sm:$0xff]  ;;  %vm124_vm3 = vcmask 261120   ;;  %s297_s15 = smov [#allocation2]   ;;  %vm198_vm4 = vcmask 416768  }
   0x7   :  { %v264_v15 = vpack.c.bf16 %v116_v14, %v115_v13  ;;  %v214_v16 = vld [vmem:[%s378_s2] ss:$0 sm:$0xff]  ;;  %s206_s16 = sshll.u32 %s297_s15, 4  ;;  %s207_s16 = int_to_ptr.vmem [resolvable:$true] %s206_s16 }
   0x8   :  { %259 = vmatpush3.bf16.msra.mxu0 %v258_v9  ;;  %v217_v21 = vld [vmem:[%s380_s4] ss:$0 sm:$0xff]  ;;  %s270_s3 = scalar_lea.vmem %s207_s16, 128  ;;  %p275_p1 = scmp.lt.s32.totalorder %s207_s16, %s207_s16 }
   0x9   :  { %238 = vmatprep.subr.mxu0 %v296_v6  ;;  %265 = vmatpush3.bf16.msra.mxu1 %v264_v15  ;;  %p271_p0 = scmp.ne.s32.totalorder %s207_s16, %s270_s3  ;;  %p276_p2 = scmp.lt.s32.totalorder %s270_s3, %s270_s3 }
   0xb   :  { %p277_p3 = por %p276_p2, %p275_p1 }
   0xc   :  { %239 = vmatpush3.msk.msra.mxu0 %vm38_vm1, %v26_v11 }
   0xd   :  { %241 = vmatmul.mubr.msk.f32.vlgmr.msra.gmra.mrb[0].mxu0 %vm34_vm2, %v21_v12  ;;  %p278_p4 = pnand %p277_p3, %p271_p0 }
  0xe0   :  { %v108_v17 = vpop.f32.mrb[0].mxu0 }
  0xe1   :  { %v109_v18 = vadd.f32 %v214_v16, %v108_v17  ;;  %v242_v19 = vpop.f32.mrb[1].mxu0 }
  0xe3   :  { %v112_v20 = vmax.f32 %v109_v18, 0.0 }
  0xe5   :  { %252 = vmatmul.mubr.msk.f32.vlgmr.msra.gmra.mrb[0].mxu1 %vm124_vm3, %v112_v20 }
 0x1b8   :  { %v194_v22 = vpop.f32.mrb[0].mxu1 }
 0x1b9   :  { %v195_v23 = vadd.f32 %v217_v21, %v194_v22  ;;  %v253_v24 = vpop.f32.mrb[1].mxu1 }
 0x1bb   :  { %199 = vst.msk [vmem:[#allocation2] sm:$0xff] %vm198_vm4, %v195_v23 }
 0x1bc   :  { %281 = shalt.err (!%p278_p4)
}
 0x1bd   :  { %s282_s18 = scalar_lea.hbm %s381_s5, 128 }
 0x1be   :  { %p283_p5 = scmp.ne.s32.totalorder %s381_s5, %s282_s18  ;;  %p286_p6 = scmp.lt.u32.totalorder %s282_s18, %s381_s5 }
 0x1c0   :  { %p288_p7 = pnand %p286_p6, %p283_p5 }
 0x1c2   :  { %291 = shalt.err (!%p288_p7)
}
 0x1c3   :  { %209 = dma.vmem_to_hbm [thread:$0]  %s207_s16, 128, %s381_s5, [#allocation3]  }
 0x1c4   :  { %292 = dma.done.wait [#allocation3], 128  }
 0x1c5   :  { %293 = vsyncadd [#allocation3], 4294967168 }
 0x1c6   :  { %213 = vsyncpa [#allocation3], 1 }

</bundles_post_ra>
